<compile_context>
chip_gen: v6e
topology: v6e:2x2x1
jax: 0.10.0
libtpu: 0.0.40
codegen_flags: <defaults>
</compile_context>

<pallas_src>
import functools

import jax
import jax.numpy as jnp
from jax.experimental import pallas as pl
from jax.experimental.pallas import tpu as pltpu


def _ceil_to(x: int, m: int) -> int:
    return ((x + m - 1) // m) * m


# ---------------------------------------------------------------------------
# Pallas kernel: (M, N, K)-tiled matmul with f32 accumulator + bias epilogue
# ---------------------------------------------------------------------------
def _linear_kernel(x_ref, w_ref, b_ref, o_ref, acc_ref):
    # x_ref: (tm, tk)  w_ref: (tk, tn)  b_ref: (1, tn)  o_ref: (tm, tn)
    # acc_ref: (tm, tn) f32 scratch, resident across the K axis.
    k = pl.program_id(2)

    @pl.when(k == 0)
    def _init():
        acc_ref[...] = jnp.zeros_like(acc_ref)

    acc_ref[...] += jnp.dot(
        x_ref[...], w_ref[...], preferred_element_type=jnp.float32
    )

    @pl.when(k == pl.num_programs(2) - 1)
    def _finalize():
        # Bias is added exactly once, in f32, in the epilogue.
        o_ref[...] = (acc_ref[...] + b_ref[...]).astype(o_ref.dtype)


def linear_pallas(
    x2d,
    w,
    b,
    *,
    tm: int = 256,
    tn: int = 256,
    tk: int = 512,
    compute_dtype=jnp.bfloat16,
):
    """y = x2d @ w + b.

    x2d: (M, K), w: (K, N), b: (N,).  Returns (M, N) in x2d.dtype.
    MXU operands are cast to `compute_dtype` (bf16 by default); accumulation
    is f32.  Arbitrary M/N/K are handled by zero-padding up to tile multiples
    and slicing the result.
    """
    M, K = x2d.shape
    K2, N = w.shape
    assert K == K2, "inner dimensions must match"
    assert b.shape == (N,)
    out_dtype = x2d.dtype

    # --- tile sizes, clamped and aligned to (8, 128) hardware tiling ---------
    tm_eff = min(tm, _ceil_to(M, 8))        # sublane axis of x / out
    tn_eff = min(tn, _ceil_to(N, 128))      # lane axis of w / out (lane-dense)
    tk_eff = min(tk, _ceil_to(K, 128))      # lane axis of x, sublane axis of w

    Mp = _ceil_to(M, tm_eff)
    Np = _ceil_to(N, tn_eff)
    Kp = _ceil_to(K, tk_eff)

    # --- cast + zero-pad operands -------------------------------------------
    x_c = x2d.astype(compute_dtype)
    w_c = w.astype(compute_dtype)
    if (Mp, Kp) != (M, K):
        x_c = jnp.pad(x_c, ((0, Mp - M), (0, Kp - K)))
    if (Kp, Np) != (K, N):
        w_c = jnp.pad(w_c, ((0, Kp - K), (0, Np - N)))
    b_f32 = b.astype(jnp.float32)
    if Np != N:
        b_f32 = jnp.pad(b_f32, (0, Np - N))
    b2d = b_f32.reshape(1, Np)

    grid = (Mp // tm_eff, Np // tn_eff, Kp // tk_eff)

    # --- VMEM budget (double-buffered inputs/outputs + f32 accumulator) -----
    cd_bytes = jnp.dtype(compute_dtype).itemsize
    out_bytes = jnp.dtype(out_dtype).itemsize
    footprint = (
        2 * tm_eff * tk_eff * cd_bytes      # x tiles (double-buffered)
        + 2 * tk_eff * tn_eff * cd_bytes    # w tiles (double-buffered)
        + 2 * 1 * tn_eff * 4                # bias tiles
        + tm_eff * tn_eff * 4               # f32 accumulator scratch
        + 2 * tm_eff * tn_eff * out_bytes   # output tiles (double-buffered)
    )
    vmem_limit = int(min(max(4 * footprint, 16 << 20), 48 << 20))

    y_padded = pl.pallas_call(
        _linear_kernel,
        out_shape=jax.ShapeDtypeStruct((Mp, Np), out_dtype),
        grid_spec=pltpu.PrefetchScalarGridSpec(
            num_scalar_prefetch=0,
            grid=grid,
            in_specs=[
                pl.BlockSpec((tm_eff, tk_eff), lambda i, j, k: (i, k)),  # x tile
                pl.BlockSpec((tk_eff, tn_eff), lambda i, j, k: (k, j)),  # w tile
                pl.BlockSpec((1, tn_eff), lambda i, j, k: (0, j)),       # bias row
            ],
            out_specs=pl.BlockSpec((tm_eff, tn_eff), lambda i, j, k: (i, j)),
            scratch_shapes=[pltpu.VMEM((tm_eff, tn_eff), jnp.float32)],
        ),
        compiler_params=pltpu.CompilerParams(
            dimension_semantics=("parallel", "parallel", "arbitrary"),
            vmem_limit_bytes=vmem_limit,
        ),
    )(x_c, w_c, b2d)

    if (Mp, Np) != (M, N):
        y_padded = y_padded[:M, :N]
    return y_padded


# ---------------------------------------------------------------------------
# myLinar forward (glue in plain JAX + Pallas hot path)
# ---------------------------------------------------------------------------
def orthogonalize_weight(w):
    # TODO(synk): SVD has no Pallas equivalent; parameter preprocessing stays in plain JAX.
    u, s, vh = jnp.linalg.svd(w, full_matrices=False)
    mat = u @ vh
    # nNorm branch: only when out_features > in_features
    if w.shape[1] > w.shape[0]:
        mat = mat / (jnp.linalg.norm(mat, axis=0, keepdims=True) + 1e-10)
    return mat


# Below this many MACs a Pallas call is pure overhead; let XLA fuse the dot.
_PALLAS_MIN_MACS = 1 << 22


def my_linar_forward(x, weight, bias, *, use_pallas=None, compute_dtype=jnp.bfloat16):
    """x: (..., in_features) -> (..., out_features)."""
    w_orth = orthogonalize_weight(weight)
    in_features, out_features = weight.shape
    lead = x.shape[:-1]
    x2d = x.reshape(-1, in_features)
    M = x2d.shape[0]

    if use_pallas is None:
        use_pallas = (M * in_features * out_features) >= _PALLAS_MIN_MACS

    if use_pallas:
        y2d = linear_pallas(x2d, w_orth, bias, compute_dtype=compute_dtype)
    else:
        y2d = jnp.matmul(x2d, w_orth) + bias
    return y2d.reshape(*lead, out_features)


# ---------------------------------------------------------------------------
# Deterministic parameter init (mimics kaiming_uniform_ with relu gain)
# ---------------------------------------------------------------------------
def init_params(key, in_features, out_features):
    # PyTorch kaiming_uniform_ on a (in, out) tensor: fan_in = size(1) = out
    gain = jnp.sqrt(2.0)
    bound = jnp.sqrt(3.0) * gain / jnp.sqrt(float(out_features))
    weight = jax.random.uniform(
        key, (in_features, out_features), jnp.float32, -bound, bound)
    bias = jnp.zeros((out_features,), jnp.float32)
    return weight, bias


if __name__ == "__main__":
    batch, seq, in_features, out_features = 2, 8, 32, 16

    key = jax.random.PRNGKey(0)
    kx, kw = jax.random.split(key)

    x = jax.random.normal(kx, (batch, seq, in_features), jnp.float32)
    weight, bias = init_params(kw, in_features, out_features)

    # Force the Pallas path so the kernel is exercised even at demo shapes
    # (the auto-dispatch would hand these tiny shapes to XLA).
    y = my_linar_forward(x, weight, bias, use_pallas=True)
    y = jax.block_until_ready(y)
    assert y.shape == (batch, seq, out_features)

    # --- correctness checks --------------------------------------------------
    w_orth = orthogonalize_weight(weight)

    # (a) tight check vs. a reference using the same bf16-cast operands.
    x_bf = x.astype(jnp.bfloat16).astype(jnp.float32)
    w_bf = w_orth.astype(jnp.bfloat16).astype(jnp.float32)
    y_ref_bf16 = jnp.matmul(x_bf, w_bf) + bias
    assert jnp.allclose(y, y_ref_bf16, atol=1e-4, rtol=1e-4), \
        "mismatch vs bf16-emulated reference"

    # (b) loose check vs. the full-f32 reference (bf16 quantization error only).
    y_ref_f32 = jnp.matmul(x, w_orth) + bias
    assert jnp.allclose(y, y_ref_f32, atol=3e-2, rtol=3e-2), \
        "mismatch vs f32 reference"

    print("KERNEL_OK")
</pallas_src>

<mosaic_0001>
module attributes {stable_mosaic.version = 11 : i64} {
  func.func @_linear_kernel(%arg0: i32, %arg1: i32, %arg2: i32, %arg3: memref<16x128xbf16, #tpu.memory_space<vmem>>, %arg4: memref<128x128xbf16, #tpu.memory_space<vmem>>, %arg5: memref<1x128xf32, #tpu.memory_space<vmem>>, %arg6: memref<16x128xf32, #tpu.memory_space<vmem>>, %arg7: memref<16x128xf32, #tpu.memory_space<vmem>>) attributes {dimension_semantics = [#tpu.dimension_semantics<parallel>, #tpu.dimension_semantics<parallel>, #tpu.dimension_semantics<arbitrary>], iteration_bounds = array<i64: 1, 1, 1>, scalar_prefetch = 0 : i64, scratch_operands = 1 : i64, tpu.core_type = #tpu.core_type<tc>, window_params = [{transform_indices = @transform_0, window_bounds = array<i64: 16, 128>}, {transform_indices = @transform_1, window_bounds = array<i64: 128, 128>}, {transform_indices = @transform_2, window_bounds = array<i64: 1, 128>}, {transform_indices = @transform_3, window_bounds = array<i64: 16, 128>}]} {
    %c0_i32 = arith.constant 0 : i32
    %0 = arith.cmpi eq, %arg2, %c0_i32 : i32
    %1 = arith.extui %0 : i1 to i32
    %c0_i32_0 = arith.constant 0 : i32
    %2 = arith.cmpi ne, %1, %c0_i32_0 : i32
    scf.if %2 {
      %cst_10 = arith.constant 0.000000e+00 : f32
      %12 = vector.broadcast %cst_10 : f32 to vector<16x128xf32>
      %c0_11 = arith.constant 0 : index
      %c0_12 = arith.constant 0 : index
      %13 = vector.load %arg7[%c0_11, %c0_12] : memref<16x128xf32, #tpu.memory_space<vmem>>, vector<16x128xf32>
      tpu.vector_store %arg7[%c0_11, %c0_12], %12 {strides = array<i32>} : memref<16x128xf32, #tpu.memory_space<vmem>>, vector<16x128xf32>,
    } else {
    }
    %c0 = arith.constant 0 : index
    %c0_1 = arith.constant 0 : index
    %3 = vector.load %arg7[%c0, %c0_1] : memref<16x128xf32, #tpu.memory_space<vmem>>, vector<16x128xf32>
    %c0_2 = arith.constant 0 : index
    %c0_3 = arith.constant 0 : index
    %4 = vector.load %arg3[%c0_2, %c0_3] : memref<16x128xbf16, #tpu.memory_space<vmem>>, vector<16x128xbf16>
    %c0_4 = arith.constant 0 : index
    %c0_5 = arith.constant 0 : index
    %5 = vector.load %arg4[%c0_4, %c0_5] : memref<128x128xbf16, #tpu.memory_space<vmem>>, vector<128x128xbf16>
    %cst = arith.constant dense<0.000000e+00> : vector<16x128xf32>
    %6 = tpu.matmul %4, %5, %cst {dimension_numbers = #tpu.dot_dimension_numbers<[1], [0], [0], [1], [0, 0, 1, 1], [], []>} : vector<16x128xbf16>, vector<128x128xbf16>, vector<16x128xf32> -> vector<16x128xf32>
    %7 = arith.addf %3, %6 : vector<16x128xf32>
    %c0_6 = arith.constant 0 : index
    %c0_7 = arith.constant 0 : index
    %8 = vector.load %arg7[%c0_6, %c0_7] : memref<16x128xf32, #tpu.memory_space<vmem>>, vector<16x128xf32>
    tpu.vector_store %arg7[%c0_6, %c0_7], %7 {strides = array<i32>} : memref<16x128xf32, #tpu.memory_space<vmem>>, vector<16x128xf32>,
    %c0_i32_8 = arith.constant 0 : i32
    %9 = arith.cmpi eq, %arg2, %c0_i32_8 : i32
    %10 = arith.extui %9 : i1 to i32
    %c0_i32_9 = arith.constant 0 : i32
    %11 = arith.cmpi ne, %10, %c0_i32_9 : i32
    scf.if %11 {
      %c0_10 = arith.constant 0 : index
      %c0_11 = arith.constant 0 : index
      %12 = vector.load %arg7[%c0_10, %c0_11] : memref<16x128xf32, #tpu.memory_space<vmem>>, vector<16x128xf32>
      %c0_12 = arith.constant 0 : index
      %c0_13 = arith.constant 0 : index
      %13 = vector.load %arg5[%c0_12, %c0_13] : memref<1x128xf32, #tpu.memory_space<vmem>>, vector<1x128xf32>
      %14 = vector.broadcast %13 : vector<1x128xf32> to vector<16x128xf32>
      %15 = arith.addf %12, %14 : vector<16x128xf32>
      %c0_14 = arith.constant 0 : index
      %c0_15 = arith.constant 0 : index
      %16 = vector.load %arg6[%c0_14, %c0_15] : memref<16x128xf32, #tpu.memory_space<vmem>>, vector<16x128xf32>
      tpu.vector_store %arg6[%c0_14, %c0_15], %15 {strides = array<i32>} : memref<16x128xf32, #tpu.memory_space<vmem>>, vector<16x128xf32>,
    } else {
    }
    return
  }
  func.func @transform_0(%arg0: i32, %arg1: i32, %arg2: i32) -> (i32, i32) {
    %c0_i32 = arith.constant 0 : i32
    return %arg0, %arg2 : i32, i32
  }
  func.func @transform_1(%arg0: i32, %arg1: i32, %arg2: i32) -> (i32, i32) {
    %c0_i32 = arith.constant 0 : i32
    return %arg2, %arg1 : i32, i32
  }
  func.func @transform_2(%arg0: i32, %arg1: i32, %arg2: i32) -> (i32, i32) {
    %c0_i32 = arith.constant 0 : i32
    %c0_i32_0 = arith.constant 0 : i32
    return %c0_i32, %arg1 : i32, i32
  }
  func.func @transform_3(%arg0: i32, %arg1: i32, %arg2: i32) -> (i32, i32) {
    %c0_i32 = arith.constant 0 : i32
    return %arg0, %arg1 : i32, i32
  }
}

</mosaic_0001>

<bundles_post_ra>
// kernel: tpu_custom_call.1
= control target key start
LH: loop header
LB: loop body
LE: loop exit
PB: predicated region body
PF: predicated region fallthrough
CT: control target
= control target key end

     0   :  { %8 = vsyncpa [#allocation4], 0  ;;  %s367_s0 = inlined_call_operand.hbm [shape: bf16[16,128], index: 0, kind: input, shape index: {}]   ;;  %s368_s1 = inlined_call_operand.hbm [shape: bf16[128,128], index: 1, kind: input, shape index: {}]   ;;  %s369_s2 = inlined_call_operand.vmem [shape: f32[1,128], index: 2, kind: input, shape index: {}]   ;;  %s370_s3 = inlined_call_operand.hbm [shape: f32[16,128], index: 3, kind: output, shape index: {}]  }
   0x1   :  { %9 = vsyncpa [#allocation7], 0 }
   0x2   :  { %10 = vsyncpa [#allocation5], 0  ;;  %s326_s12 = smov [#allocation3]  }
   0x3   :  { %s16_s13 = sshll.u32 %s326_s12, 4  ;;  %s17_s13 = int_to_ptr.vmem [resolvable:$true] %s16_s13 }
   0x4   :  { %s268_s14 = scalar_lea.vmem %s17_s13, 128  ;;  %p273_p1 = scmp.lt.s32.totalorder %s17_s13, %s17_s13 }
   0x5   :  { %p269_p0 = scmp.ne.s32.totalorder %s17_s13, %s268_s14  ;;  %p274_p2 = scmp.lt.s32.totalorder %s268_s14, %s268_s14 }
   0x7   :  { %p275_p3 = por %p274_p2, %p273_p1 }
   0x9   :  { %p276_p4 = pnand %p275_p3, %p269_p0 }
   0xb   :  { %279 = shalt.err (!%p276_p4)
}
   0xc   :  { %s327_s15 = smov 64   ;;  %s328_s16 = smov 4  }
   0xd   :  { %22 = dma.hbm_to_vmem [thread:$0]  %s367_s0, 128, %s17_s13, [#allocation4], %s327_s15, %s327_s15, %s328_s16  }
   0xe   :  { %s329_s19 = smov [#allocation6]  }
   0xf   :  { %s28_s20 = sshll.u32 %s329_s19, 4  ;;  %s29_s20 = int_to_ptr.vmem [resolvable:$true] %s28_s20 }
  0x10   :  { %s288_s21 = scalar_lea.vmem %s29_s20, 1024  ;;  %p293_p6 = scmp.lt.s32.totalorder %s29_s20, %s29_s20 }
  0x11   :  { %p289_p5 = scmp.ne.s32.totalorder %s29_s20, %s288_s21  ;;  %p294_p7 = scmp.lt.s32.totalorder %s288_s21, %s288_s21 }
  0x13   :  { %p295_p8 = por %p294_p7, %p293_p6 }
  0x15   :  { %p296_p9 = pnand %p295_p8, %p289_p5 }
  0x17   :  { %299 = shalt.err (!%p296_p9)
}
  0x18   :  { %34 = dma.hbm_to_vmem [thread:$0]  %s368_s1, 1024, %s29_s20, [#allocation7], %s327_s15, %s327_s15, %s328_s16  }
  0x19   :  { %320 = dma.done.wait [#allocation4], 128  }
  0x1a   :  { %321 = vsyncadd [#allocation4], 4294967168 }
  0x1b   :  { %322 = dma.done.wait [#allocation7], 1024  }
  0x1c   :  { %323 = vsyncadd [#allocation7], 4294966272  ;;  %v330_v0 = vmov 0.0   ;;  %vm331_vm0 = vmmov 0   ;;  %v251_v1 = vld [vmem:[#allocation6 + $0x38] sm:$0xff]   ;;  %v252_v2 = vld [vmem:[#allocation6 + $0x30] sm:$0xff]  }
  0x1d   :  { %222 = vmatprep.subr.bf16.mxu0 %v330_v0  ;;  %238 = vmatprep.mubr.msk.bf16.mxu0 %vm331_vm0, %v330_v0  ;;  %v253_v3 = vld [vmem:[#allocation6 + $0x28] sm:$0xff]   ;;  %v254_v4 = vld [vmem:[#allocation6 + $0x20] sm:$0xff]   ;;  %v255_v5 = vld [vmem:[#allocation6 + $0x18] sm:$0xff]   ;;  %s332_s24 = smov [#allocation8]  }
  0x1e   :  { %223 = vmatpush3.bf16.msra.mxu0 %v251_v1  ;;  %v256_v6 = vld [vmem:[#allocation6 + $0x10] sm:$0xff]   ;;  %v257_v7 = vld [vmem:[#allocation6 + $0x8] sm:$0xff]   ;;  %v258_v8 = vld [vmem:[#allocation6] sm:$0xff]   ;;  %s190_s25 = sshll.u32 %s332_s24, 4  ;;  %s191_s25 = int_to_ptr.vmem [resolvable:$true] %s190_s25 }
  0x1f   :  { %224 = vmatprep.subr.bf16.mxu0 %v330_v0  ;;  %v259_v9 = vld [vmem:[#allocation3] sm:$0xff]   ;;  %s300_s26 = scalar_lea.vmem %s191_s25, 256  ;;  %p305_p11 = scmp.lt.s32.totalorder %s191_s25, %s191_s25 }
  0x20   :  { %v212_v10 = vld [vmem:[%s369_s2] ss:$0 sm:$0xff]  ;;  %p301_p10 = scmp.ne.s32.totalorder %s191_s25, %s300_s26  ;;  %p306_p12 = scmp.lt.s32.totalorder %s300_s26, %s300_s26 }
  0x22   :  { %225 = vmatpush3.bf16.msra.mxu0 %v252_v2  ;;  %p307_p13 = por %p306_p12, %p305_p11 }
  0x23   :  { %226 = vmatprep.subr.bf16.mxu0 %v330_v0 }
  0x24   :  { %p308_p0 = pnand %p307_p13, %p301_p10 }
  0x26   :  { %227 = vmatpush3.bf16.msra.mxu0 %v253_v3 }
  0x27   :  { %228 = vmatprep.subr.bf16.mxu0 %v330_v0 }
  0x2a   :  { %229 = vmatpush3.bf16.msra.mxu0 %v254_v4 }
  0x2b   :  { %230 = vmatprep.subr.bf16.mxu0 %v330_v0 }
  0x2e   :  { %231 = vmatpush3.bf16.msra.mxu0 %v255_v5 }
  0x2f   :  { %232 = vmatprep.subr.bf16.mxu0 %v330_v0 }
  0x32   :  { %233 = vmatpush3.bf16.msra.mxu0 %v256_v6 }
  0x33   :  { %234 = vmatprep.subr.bf16.mxu0 %v330_v0 }
  0x36   :  { %235 = vmatpush3.bf16.msra.mxu0 %v257_v7 }
  0x37   :  { %236 = vmatprep.subr.bf16.mxu0 %v330_v0 }
  0x3a   :  { %237 = vmatpush3.bf16.msra.mxu0 %v258_v8 }
  0x3d   :  { %239 = vmatmul.mubr.bf16.vlgmr.msra.gmra.mxu0 %v259_v9 }
  0xfd   :  { %v158_v11 = vpop.f32.mrf.mxu0 }
  0xfe   :  { %v181_v12 = vadd.f32 %v212_v10, %v158_v11 }
  0xff   :  { %v240_v13 = vpop.f32.mrf.mxu0 }
 0x100   :  { %183 = vst [vmem:[#allocation8] sm:$0xff] %v181_v12 }
 0x101   :  { %v161_v14 = vpop.f32.mrf.mxu0 }
 0x102   :  { %v182_v15 = vadd.f32 %v212_v10, %v161_v14 }
 0x103   :  { %v241_v16 = vpop.f32.mrf.mxu0 }
 0x104   :  { %184 = vst [vmem:[#allocation8 + $0x8] sm:$0xff] %v182_v15 }
 0x105   :  { %311 = shalt.err (!%p308_p0)
}
 0x106   :  { %s333_s27 = smov 128   ;;  %s334_s2 = smov 8  }
 0x107   :  { %196 = dma.vmem_to_hbm [thread:$0]  %s191_s25, 256, %s370_s3, [#allocation5], %s333_s27, %s333_s27, %s334_s2  }
 0x108   :  { %324 = dma.done.wait [#allocation5], 256  }
 0x109   :  { %325 = vsyncadd [#allocation5], 4294967040 }
 0x10a   :  { %200 = vsyncpa [#allocation4], 1 }
 0x10b   :  { %201 = vsyncpa [#allocation7], 1 }
 0x10c   :  { %202 = vsyncpa [#allocation5], 1 }

</bundles_post_ra>
